<compile_context>
chip_gen: v7x
topology: tpu7x:2x2x1
jax: 0.10.0
libtpu: 0.0.40
codegen_flags: <defaults>
</compile_context>

<pallas_src>
import jax
import jax.numpy as jnp
from jax.experimental import pallas as pl
from jax.experimental.pallas import tpu as pltpu

_LANE = 128
_BF16_SUBLANE = 16  # bf16 packs two rows per sublane


def _round_up(v, m):
    return ((v + m - 1) // m) * m


def _make_mlp_kernel(n_layers):
    """Kernel refs: (x, w0, b0, w1, b1, ..., w_{n-1}, b_{n-1}, out)."""

    def kernel(*refs):
        x_ref = refs[0]
        out_ref = refs[-1]
        params = refs[1:-1]

        h = x_ref[...]                               # bf16 (TILE_B, in_pad)
        for li in range(n_layers):
            w = params[2 * li][...]                  # bf16 (in_pad_i, out_pad_i)
            b = params[2 * li + 1][...]              # f32  (1, out_pad_i)
            acc = jnp.dot(h, w, preferred_element_type=jnp.float32) + b
            if li < n_layers - 1:                    # ReLU on all but last layer
                h = jnp.maximum(acc, 0.0).astype(jnp.bfloat16)
            else:
                h = acc                              # final layer: plain linear
        out_ref[...] = h.astype(out_ref.dtype)

    return kernel


def digit_classification_forward(x, weights, biases, input_size, output_size,
                                 tile_b=None):
    """Pallas implementation of DigitClassification.forward.

    x:        any shape flattening to (-1, input_size)
    weights:  list of (in_i, out_i) float32 arrays (already transposed vs torch)
    biases:   list of (out_i,) float32 arrays
    """
    x2d = jnp.reshape(x, (-1, input_size)).astype(jnp.float32)
    batch = x2d.shape[0]
    n_layers = len(weights)

    # --- pad every layer dimension up to a lane multiple (128) ---------------
    dims = [input_size] + [int(w.shape[1]) for w in weights]
    pdims = [_round_up(d, _LANE) for d in dims]

    flat_params = []
    for i, (w, b) in enumerate(zip(weights, biases)):
        wp = jnp.zeros((pdims[i], pdims[i + 1]), jnp.float32)
        wp = wp.at[:dims[i], :dims[i + 1]].set(w)
        bp = jnp.zeros((1, pdims[i + 1]), jnp.float32)
        bp = bp.at[:, :dims[i + 1]].set(jnp.reshape(b, (1, -1)))
        flat_params.append(wp.astype(jnp.bfloat16))  # bf16 weights (MXU native)
        flat_params.append(bp)                       # f32 bias

    # --- batch tiling ---------------------------------------------------------
    if tile_b is None:
        # Fill the MXU on real batches; minimal padding on tiny ones. Cap keeps
        # per-step activation VMEM small on all of v5e/v6e/v7x.
        tile_b = min(256, _round_up(batch, _BF16_SUBLANE))
    tile_b = _round_up(tile_b, _BF16_SUBLANE)
    padded_batch = _round_up(batch, tile_b)

    # Activations in bf16: halves HBM->VMEM DMA; numerically identical because
    # the matmul operand is cast to bf16 anyway.
    x_pad = jnp.zeros((padded_batch, pdims[0]), jnp.bfloat16)
    x_pad = x_pad.at[:batch, :input_size].set(x2d.astype(jnp.bfloat16))

    grid = (padded_batch // tile_b,)

    in_specs = [pl.BlockSpec((tile_b, pdims[0]), lambda i: (i, 0))]
    for li in range(n_layers):
        # Constant index_map: weights/biases DMA'd once, resident across grid.
        in_specs.append(pl.BlockSpec((pdims[li], pdims[li + 1]), lambda i: (0, 0)))
        in_specs.append(pl.BlockSpec((1, pdims[li + 1]), lambda i: (0, 0)))
    out_spec = pl.BlockSpec((tile_b, pdims[-1]), lambda i: (i, 0))

    flops = 2 * padded_batch * sum(pdims[i] * pdims[i + 1] for i in range(n_layers))
    bytes_accessed = (
        int(x_pad.size) * x_pad.dtype.itemsize
        + sum(int(p.size) * p.dtype.itemsize for p in flat_params)
        + padded_batch * pdims[-1] * 4
    )

    kernel = _make_mlp_kernel(n_layers)

    out = pl.pallas_call(
        kernel,
        grid=grid,
        in_specs=in_specs,
        out_specs=out_spec,
        out_shape=jax.ShapeDtypeStruct((padded_batch, pdims[-1]), jnp.float32),
        compiler_params=pltpu.CompilerParams(
            dimension_semantics=("parallel",)),
        cost_estimate=pl.CostEstimate(
            flops=flops, bytes_accessed=bytes_accessed, transcendentals=0),
    )(x_pad, *flat_params)

    return out[:batch, :output_size]


def _init_params(key, features, output_size):
    """Deterministic init mimicking nn.Linear's U(-1/sqrt(in), 1/sqrt(in))."""
    dims = list(features) + [output_size]
    weights, biases = [], []
    for i in range(len(dims) - 1):
        fan_in, fan_out = dims[i], dims[i + 1]
        key, kw, kb = jax.random.split(key, 3)
        bound = 1.0 / jnp.sqrt(jnp.float32(fan_in))
        # Stored directly as (in, out) == W.T of the PyTorch (out, in) weight.
        w = jax.random.uniform(kw, (fan_in, fan_out), jnp.float32, -bound, bound)
        b = jax.random.uniform(kb, (fan_out,), jnp.float32, -bound, bound)
        weights.append(w)
        biases.append(b)
    return weights, biases


def _reference_forward(x, weights, biases, input_size):
    """Reference with the same bf16-matmul / f32-accumulate numerics."""
    h = jnp.reshape(x, (-1, input_size)).astype(jnp.float32)
    n = len(weights)
    for i, (w, b) in enumerate(zip(weights, biases)):
        h = jnp.dot(h.astype(jnp.bfloat16), w.astype(jnp.bfloat16),
                    preferred_element_type=jnp.float32) + b
        if i < n - 1:
            h = jnp.maximum(h, 0.0)
    return h


if __name__ == "__main__":
    # Small configuration consistent with the module constructor:
    # DigitClassification(input_size=64, output_size=10,
    #                     features=[64, 128, 256, 128])
    input_size = 64          # e.g. 8x8 single-channel digits
    output_size = 10
    features = [input_size, 128, 256, 128]
    batch = 8

    key = jax.random.PRNGKey(0)
    key, kx = jax.random.split(key)
    # NCHW input, as PyTorch would supply: (B, 1, 8, 8) -> view(-1, 64)
    x = jax.random.normal(kx, (batch, 1, 8, 8), jnp.float32)

    weights, biases = _init_params(key, features, output_size)

    out = digit_classification_forward(x, weights, biases, input_size, output_size)
    out = jax.block_until_ready(out)

    ref = _reference_forward(x, weights, biases, input_size)
    assert out.shape == (batch, output_size)
    assert jnp.allclose(out, ref, atol=2e-2, rtol=2e-2), "mismatch vs reference"

    print("KERNEL_OK")
</pallas_src>

<mosaic_0001>
module attributes {stable_mosaic.version = 11 : i64} {
  func.func @kernel(%arg0: i32, %arg1: memref<16x128xbf16, #tpu.memory_space<vmem>>, %arg2: memref<128x128xbf16, #tpu.memory_space<vmem>>, %arg3: memref<1x128xf32, #tpu.memory_space<vmem>>, %arg4: memref<128x256xbf16, #tpu.memory_space<vmem>>, %arg5: memref<1x256xf32, #tpu.memory_space<vmem>>, %arg6: memref<256x128xbf16, #tpu.memory_space<vmem>>, %arg7: memref<1x128xf32, #tpu.memory_space<vmem>>, %arg8: memref<128x128xbf16, #tpu.memory_space<vmem>>, %arg9: memref<1x128xf32, #tpu.memory_space<vmem>>, %arg10: memref<16x128xf32, #tpu.memory_space<vmem>>) attributes {dimension_semantics = [#tpu.dimension_semantics<parallel>], iteration_bounds = array<i64: 1>, scalar_prefetch = 0 : i64, scratch_operands = 0 : i64, tpu.core_type = #tpu.core_type<tc>, window_params = [{transform_indices = @transform_0, window_bounds = array<i64: 16, 128>}, {pipeline_mode = #tpu.pipeline_mode<synchronous>, transform_indices = @transform_1, window_bounds = array<i64: 128, 128>}, {pipeline_mode = #tpu.pipeline_mode<synchronous>, transform_indices = @transform_2, window_bounds = array<i64: 1, 128>}, {pipeline_mode = #tpu.pipeline_mode<synchronous>, transform_indices = @transform_3, window_bounds = array<i64: 128, 256>}, {pipeline_mode = #tpu.pipeline_mode<synchronous>, transform_indices = @transform_4, window_bounds = array<i64: 1, 256>}, {pipeline_mode = #tpu.pipeline_mode<synchronous>, transform_indices = @transform_5, window_bounds = array<i64: 256, 128>}, {pipeline_mode = #tpu.pipeline_mode<synchronous>, transform_indices = @transform_6, window_bounds = array<i64: 1, 128>}, {pipeline_mode = #tpu.pipeline_mode<synchronous>, transform_indices = @transform_7, window_bounds = array<i64: 128, 128>}, {pipeline_mode = #tpu.pipeline_mode<synchronous>, transform_indices = @transform_8, window_bounds = array<i64: 1, 128>}, {transform_indices = @transform_9, window_bounds = array<i64: 16, 128>}]} {
    %c0 = arith.constant 0 : index
    %c0_0 = arith.constant 0 : index
    %0 = vector.load %arg1[%c0, %c0_0] : memref<16x128xbf16, #tpu.memory_space<vmem>>, vector<16x128xbf16>
    %c0_1 = arith.constant 0 : index
    %c0_2 = arith.constant 0 : index
    %1 = vector.load %arg2[%c0_1, %c0_2] : memref<128x128xbf16, #tpu.memory_space<vmem>>, vector<128x128xbf16>
    %c0_3 = arith.constant 0 : index
    %c0_4 = arith.constant 0 : index
    %2 = vector.load %arg3[%c0_3, %c0_4] : memref<1x128xf32, #tpu.memory_space<vmem>>, vector<1x128xf32>
    %cst = arith.constant dense<0.000000e+00> : vector<16x128xf32>
    %3 = tpu.matmul %0, %1, %cst {dimension_numbers = #tpu.dot_dimension_numbers<[1], [0], [0], [1], [0, 0, 1, 1], [], []>} : vector<16x128xbf16>, vector<128x128xbf16>, vector<16x128xf32> -> vector<16x128xf32>
    %4 = vector.broadcast %2 : vector<1x128xf32> to vector<16x128xf32>
    %5 = arith.addf %3, %4 : vector<16x128xf32>
    %cst_5 = arith.constant 0.000000e+00 : f32
    %6 = vector.broadcast %cst_5 : f32 to vector<16x128xf32>
    %7 = arith.maximumf %5, %6 : vector<16x128xf32>
    %8 = arith.truncf %7 : vector<16x128xf32> to vector<16x128xbf16>
    %c0_6 = arith.constant 0 : index
    %c0_7 = arith.constant 0 : index
    %9 = vector.load %arg4[%c0_6, %c0_7] : memref<128x256xbf16, #tpu.memory_space<vmem>>, vector<128x256xbf16>
    %c0_8 = arith.constant 0 : index
    %c0_9 = arith.constant 0 : index
    %10 = vector.load %arg5[%c0_8, %c0_9] : memref<1x256xf32, #tpu.memory_space<vmem>>, vector<1x256xf32>
    %cst_10 = arith.constant dense<0.000000e+00> : vector<16x256xf32>
    %11 = tpu.matmul %8, %9, %cst_10 {dimension_numbers = #tpu.dot_dimension_numbers<[1], [0], [0], [1], [0, 0, 1, 1], [], []>} : vector<16x128xbf16>, vector<128x256xbf16>, vector<16x256xf32> -> vector<16x256xf32>
    %12 = vector.broadcast %10 : vector<1x256xf32> to vector<16x256xf32>
    %13 = arith.addf %11, %12 : vector<16x256xf32>
    %cst_11 = arith.constant 0.000000e+00 : f32
    %14 = vector.broadcast %cst_11 : f32 to vector<16x256xf32>
    %15 = arith.maximumf %13, %14 : vector<16x256xf32>
    %16 = arith.truncf %15 : vector<16x256xf32> to vector<16x256xbf16>
    %c0_12 = arith.constant 0 : index
    %c0_13 = arith.constant 0 : index
    %17 = vector.load %arg6[%c0_12, %c0_13] : memref<256x128xbf16, #tpu.memory_space<vmem>>, vector<256x128xbf16>
    %c0_14 = arith.constant 0 : index
    %c0_15 = arith.constant 0 : index
    %18 = vector.load %arg7[%c0_14, %c0_15] : memref<1x128xf32, #tpu.memory_space<vmem>>, vector<1x128xf32>
    %cst_16 = arith.constant dense<0.000000e+00> : vector<16x128xf32>
    %19 = tpu.matmul %16, %17, %cst_16 {dimension_numbers = #tpu.dot_dimension_numbers<[1], [0], [0], [1], [0, 0, 1, 1], [], []>} : vector<16x256xbf16>, vector<256x128xbf16>, vector<16x128xf32> -> vector<16x128xf32>
    %20 = vector.broadcast %18 : vector<1x128xf32> to vector<16x128xf32>
    %21 = arith.addf %19, %20 : vector<16x128xf32>
    %cst_17 = arith.constant 0.000000e+00 : f32
    %22 = vector.broadcast %cst_17 : f32 to vector<16x128xf32>
    %23 = arith.maximumf %21, %22 : vector<16x128xf32>
    %24 = arith.truncf %23 : vector<16x128xf32> to vector<16x128xbf16>
    %c0_18 = arith.constant 0 : index
    %c0_19 = arith.constant 0 : index
    %25 = vector.load %arg8[%c0_18, %c0_19] : memref<128x128xbf16, #tpu.memory_space<vmem>>, vector<128x128xbf16>
    %c0_20 = arith.constant 0 : index
    %c0_21 = arith.constant 0 : index
    %26 = vector.load %arg9[%c0_20, %c0_21] : memref<1x128xf32, #tpu.memory_space<vmem>>, vector<1x128xf32>
    %cst_22 = arith.constant dense<0.000000e+00> : vector<16x128xf32>
    %27 = tpu.matmul %24, %25, %cst_22 {dimension_numbers = #tpu.dot_dimension_numbers<[1], [0], [0], [1], [0, 0, 1, 1], [], []>} : vector<16x128xbf16>, vector<128x128xbf16>, vector<16x128xf32> -> vector<16x128xf32>
    %28 = vector.broadcast %26 : vector<1x128xf32> to vector<16x128xf32>
    %29 = arith.addf %27, %28 : vector<16x128xf32>
    %c0_23 = arith.constant 0 : index
    %c0_24 = arith.constant 0 : index
    %30 = vector.load %arg10[%c0_23, %c0_24] : memref<16x128xf32, #tpu.memory_space<vmem>>, vector<16x128xf32>
    tpu.vector_store %arg10[%c0_23, %c0_24], %29 {strides = array<i32>} : memref<16x128xf32, #tpu.memory_space<vmem>>, vector<16x128xf32>,
    return
  }
  func.func @transform_0(%arg0: i32) -> (i32, i32) {
    %c0_i32 = arith.constant 0 : i32
    %c0_i32_0 = arith.constant 0 : i32
    return %arg0, %c0_i32 : i32, i32
  }
  func.func @transform_1(%arg0: i32) -> (i32, i32) {
    %c0_i32 = arith.constant 0 : i32
    %c0_i32_0 = arith.constant 0 : i32
    %c0_i32_1 = arith.constant 0 : i32
    return %c0_i32, %c0_i32_0 : i32, i32
  }
  func.func @transform_2(%arg0: i32) -> (i32, i32) {
    %c0_i32 = arith.constant 0 : i32
    %c0_i32_0 = arith.constant 0 : i32
    %c0_i32_1 = arith.constant 0 : i32
    return %c0_i32, %c0_i32_0 : i32, i32
  }
  func.func @transform_3(%arg0: i32) -> (i32, i32) {
    %c0_i32 = arith.constant 0 : i32
    %c0_i32_0 = arith.constant 0 : i32
    %c0_i32_1 = arith.constant 0 : i32
    return %c0_i32, %c0_i32_0 : i32, i32
  }
  func.func @transform_4(%arg0: i32) -> (i32, i32) {
    %c0_i32 = arith.constant 0 : i32
    %c0_i32_0 = arith.constant 0 : i32
    %c0_i32_1 = arith.constant 0 : i32
    return %c0_i32, %c0_i32_0 : i32, i32
  }
  func.func @transform_5(%arg0: i32) -> (i32, i32) {
    %c0_i32 = arith.constant 0 : i32
    %c0_i32_0 = arith.constant 0 : i32
    %c0_i32_1 = arith.constant 0 : i32
    return %c0_i32, %c0_i32_0 : i32, i32
  }
  func.func @transform_6(%arg0: i32) -> (i32, i32) {
    %c0_i32 = arith.constant 0 : i32
    %c0_i32_0 = arith.constant 0 : i32
    %c0_i32_1 = arith.constant 0 : i32
    return %c0_i32, %c0_i32_0 : i32, i32
  }
  func.func @transform_7(%arg0: i32) -> (i32, i32) {
    %c0_i32 = arith.constant 0 : i32
    %c0_i32_0 = arith.constant 0 : i32
    %c0_i32_1 = arith.constant 0 : i32
    return %c0_i32, %c0_i32_0 : i32, i32
  }
  func.func @transform_8(%arg0: i32) -> (i32, i32) {
    %c0_i32 = arith.constant 0 : i32
    %c0_i32_0 = arith.constant 0 : i32
    %c0_i32_1 = arith.constant 0 : i32
    return %c0_i32, %c0_i32_0 : i32, i32
  }
  func.func @transform_9(%arg0: i32) -> (i32, i32) {
    %c0_i32 = arith.constant 0 : i32
    %c0_i32_0 = arith.constant 0 : i32
    return %arg0, %c0_i32 : i32, i32
  }
}

</mosaic_0001>

<bundles_post_ra>
// kernel: tpu_custom_call.1
= control target key start
LH: loop header
LB: loop body
LE: loop exit
PB: predicated region body
PF: predicated region fallthrough
CT: control target
= control target key end

     0   :  { %14 = vsyncpa [#allocation3], 0  ;;  %s1235_s0 = inlined_call_operand.hbm [shape: bf16[16,128], index: 0, kind: input, shape index: {}]   ;;  %s1236_s1 = inlined_call_operand.hbm [shape: bf16[128,128], index: 1, kind: input, shape index: {}]   ;;  %s1237_s2 = inlined_call_operand.vmem [shape: f32[1,128], index: 2, kind: input, shape index: {}]   ;;  %s1238_s3 = inlined_call_operand.hbm [shape: bf16[128,256], index: 3, kind: input, shape index: {}]   ;;  %s1239_s4 = inlined_call_operand.vmem [shape: f32[1,256], index: 4, kind: input, shape index: {}]   ;;  %s1240_s5 = inlined_call_operand.hbm [shape: bf16[256,128], index: 5, kind: input, shape index: {}]   ;;  %s1241_s6 = inlined_call_operand.vmem [shape: f32[1,128], index: 6, kind: input, shape index: {}]   ;;  %s1242_s7 = inlined_call_operand.hbm [shape: bf16[128,128], index: 7, kind: input, shape index: {}]   ;;  %s1243_s8 = inlined_call_operand.vmem [shape: f32[1,128], index: 8, kind: input, shape index: {}]   ;;  %s1244_s9 = inlined_call_operand.hbm [shape: f32[16,128], index: 9, kind: output, shape index: {}]  }
   0x1   :  { %15 = vsyncpa [#allocation6], 0 }
   0x2   :  { %16 = vsyncpa [#allocation9], 0 }
   0x3   :  { %17 = vsyncpa [#allocation4], 0  ;;  %s1036_s30 = smov [#allocation5]   ;;  %s1037_s11 = smov [#allocation8]  }
   0x4   :  { %s35_s10 = sshll.u32 %s1036_s30, 4  ;;  %s63_s12 = sshll.u32 %s1037_s11, 4  ;;  %s36_s10 = int_to_ptr.vmem [resolvable:$true] %s35_s10  ;;  %s1099_s12 = int_to_ptr.vmem [resolvable:$true] %s63_s12 }
   0x5   :  { %s896_s15 = scalar_lea.hbm %s1236_s1, 1024 }
   0x6   :  { %p897_p0 = scmp.ne.s32.totalorder %s1236_s1, %s896_s15  ;;  %p900_p1 = scmp.lt.u32.totalorder %s896_s15, %s1236_s1 }
   0x8   :  { %p902_p2 = pnand %p900_p1, %p897_p0 }
   0xa   :  { %905 = shalt.err (!%p902_p2)
}
   0xb   :  { %s906_s20 = scalar_lea.vmem %s36_s10, 1024  ;;  %p911_p4 = scmp.lt.s32.totalorder %s36_s10, %s36_s10 }
   0xc   :  { %p907_p3 = scmp.ne.s32.totalorder %s36_s10, %s906_s20  ;;  %p912_p5 = scmp.lt.s32.totalorder %s906_s20, %s906_s20 }
   0xe   :  { %p913_p6 = por %p912_p5, %p911_p4 }
  0x10   :  { %p914_p7 = pnand %p913_p6, %p907_p3 }
  0x12   :  { %917 = shalt.err (!%p914_p7)
}
  0x13   :  { %s1038_s21 = smov 64   ;;  %s1039_s22 = smov 4  }
  0x14   :  { %41 = dma.hbm_to_vmem [thread:$0]  %s1236_s1, 1024, %s36_s10, [#allocation6], %s1038_s21, %s1038_s21, %s1039_s22  }
  0x15   :  { %s918_s27 = scalar_lea.hbm %s1240_s5, 2048 }
  0x16   :  { %p919_p8 = scmp.ne.s32.totalorder %s1240_s5, %s918_s27  ;;  %p922_p9 = scmp.lt.u32.totalorder %s918_s27, %s1240_s5 }
  0x18   :  { %p924_p10 = pnand %p922_p9, %p919_p8 }
  0x1a   :  { %927 = shalt.err (!%p924_p10)
}
  0x1b   :  { %s928_s13 = scalar_lea.vmem %s1099_s12, 2048  ;;  %p933_p12 = scmp.lt.s32.totalorder %s1099_s12, %s1099_s12 }
  0x1c   :  { %p929_p11 = scmp.ne.s32.totalorder %s1099_s12, %s928_s13  ;;  %p934_p13 = scmp.lt.s32.totalorder %s928_s13, %s928_s13 }
  0x1e   :  { %p935_p0 = por %p934_p13, %p933_p12 }
  0x20   :  { %p936_p1 = pnand %p935_p0, %p929_p11 }
  0x22   :  { %939 = shalt.err (!%p936_p1)
}
  0x23   :  { %69 = dma.hbm_to_vmem [thread:$0]  %s1240_s5, 2048, %s1099_s12, [#allocation9], %s1038_s21, %s1038_s21, %s1039_s22  }
  0x24   :  { %s1040_s14 = smov [#allocation2]   ;;  %s1041_s16 = smov [#allocation7]  }
  0x25   :  { %s23_s15 = sshll.u32 %s1040_s14, 4  ;;  %s49_s17 = sshll.u32 %s1041_s16, 4  ;;  %s24_s15 = int_to_ptr.vmem [resolvable:$true] %s23_s15  ;;  %s1136_s17 = int_to_ptr.vmem [resolvable:$true] %s49_s17 }
  0x26   :  { %s940_s20 = scalar_lea.hbm %s1235_s0, 128 }
  0x27   :  { %p941_p2 = scmp.ne.s32.totalorder %s1235_s0, %s940_s20  ;;  %p944_p3 = scmp.lt.u32.totalorder %s940_s20, %s1235_s0 }
  0x29   :  { %p946_p4 = pnand %p944_p3, %p941_p2 }
  0x2b   :  { %949 = shalt.err (!%p946_p4)
}
  0x2c   :  { %s950_s5 = scalar_lea.vmem %s24_s15, 128  ;;  %p955_p6 = scmp.lt.s32.totalorder %s24_s15, %s24_s15 }
  0x2d   :  { %p951_p5 = scmp.ne.s32.totalorder %s24_s15, %s950_s5  ;;  %p956_p7 = scmp.lt.s32.totalorder %s950_s5, %s950_s5 }
  0x2f   :  { %p957_p8 = por %p956_p7, %p955_p6 }
  0x31   :  { %p958_p9 = pnand %p957_p8, %p951_p5 }
  0x33   :  { %961 = shalt.err (!%p958_p9)
}
  0x34   :  { %29 = dma.hbm_to_vmem [thread:$0]  %s1235_s0, 128, %s24_s15, [#allocation3], %s1038_s21, %s1038_s21, %s1039_s22  }
  0x35   :  { %s962_s30 = scalar_lea.hbm %s1238_s3, 2048 }
  0x36   :  { %p963_p10 = scmp.ne.s32.totalorder %s1238_s3, %s962_s30  ;;  %p966_p11 = scmp.lt.u32.totalorder %s962_s30, %s1238_s3 }
  0x38   :  { %p968_p12 = pnand %p966_p11, %p963_p10 }
  0x3a   :  { %971 = shalt.err (!%p968_p12)
}
  0x3b   :  { %s972_s14 = scalar_lea.vmem %s1136_s17, 2048  ;;  %p977_p0 = scmp.lt.s32.totalorder %s1136_s17, %s1136_s17 }
  0x3c   :  { %p973_p13 = scmp.ne.s32.totalorder %s1136_s17, %s972_s14  ;;  %p978_p1 = scmp.lt.s32.totalorder %s972_s14, %s972_s14 }
  0x3e   :  { %p979_p2 = por %p978_p1, %p977_p0 }
  0x40   :  { %p980_p3 = pnand %p979_p2, %p973_p13 }
  0x42   :  { %983 = shalt.err (!%p980_p3)
}
  0x43   :  { %s1042_s0 = smov 128   ;;  %s1043_s15 = smov 8  }
  0x44   :  { %55 = dma.hbm_to_vmem [thread:$0]  %s1238_s3, 2048, %s1136_s17, [#allocation6], %s1042_s0, %s1042_s0, %s1043_s15  }
  0x45   :  { %s1044_s19 = smov [#allocation10]   ;;  %s984_s25 = scalar_lea.hbm %s1242_s7, 1024 }
  0x46   :  { %s77_s20 = sshll.u32 %s1044_s19, 4  ;;  %p985_p4 = scmp.ne.s32.totalorder %s1242_s7, %s984_s25  ;;  %s78_s20 = int_to_ptr.vmem [resolvable:$true] %s77_s20 }
  0x47   :  { %p988_p5 = scmp.lt.u32.totalorder %s984_s25, %s1242_s7 }
  0x49   :  { %p990_p6 = pnand %p988_p5, %p985_p4 }
  0x4b   :  { %993 = shalt.err (!%p990_p6)
}
  0x4c   :  { %s994_s28 = scalar_lea.vmem %s78_s20, 1024  ;;  %p999_p8 = scmp.lt.s32.totalorder %s78_s20, %s78_s20 }
  0x4d   :  { %p995_p7 = scmp.ne.s32.totalorder %s78_s20, %s994_s28  ;;  %p1000_p9 = scmp.lt.s32.totalorder %s994_s28, %s994_s28 }
  0x4f   :  { %p1001_p10 = por %p1000_p9, %p999_p8 }
  0x51   :  { %p1002_p11 = pnand %p1001_p10, %p995_p7 }
  0x53   :  { %1005 = shalt.err (!%p1002_p11)
}
  0x54   :  { %83 = dma.hbm_to_vmem [thread:$0]  %s1242_s7, 1024, %s78_s20, [#allocation9], %s1038_s21, %s1038_s21, %s1039_s22  }
  0x55   :  { %1028 = dma.done.wait [#allocation3], 128  }
  0x56   :  { %1029 = vsyncadd [#allocation3], 4294967168 }
  0x57   :  { %1030 = dma.done.wait [#allocation6], 3072  }
  0x58   :  { %1031 = vsyncadd [#allocation6], 4294964224 }
  0x59   :  { %1032 = dma.done.wait [#allocation9], 3072  }
  0x5a   :  { %1033 = vsyncadd [#allocation9], 4294964224  ;;  %v1045_v0 = vmov 0.0   ;;  %vm1046_vm0 = vmmov 0   ;;  %v839_v1 = vld [vmem:[#allocation5] sm:$0xff]   ;;  %v840_v2 = vld [vmem:[#allocation5 + $0x8] sm:$0xff]   ;;  %v243_v58 = vlaneseq }
  0x5b   :  { %786 = vmatprep.subr.bf16.mxu0 %v1045_v0  ;;  %802 = vmatprep.mubr.msk.bf16.mxu0 %vm1046_vm0, %v1045_v0  ;;  %v841_v3 = vld [vmem:[#allocation5 + $0x10] sm:$0xff]   ;;  %v842_v4 = vld [vmem:[#allocation5 + $0x18] sm:$0xff]   ;;  %v848_v5 = vld [vmem:[#allocation7 + $0x4] ss:$8 sps:$4 sm:$0xff]   ;;  %v1047_v26 = vmov 0   ;;  %s1048_s13 = smov [#allocation11]  }
  0x5c   :  { %787 = vmatpush3.bf16.msra.mxu0 %v839_v1  ;;  %v850_v6 = vld [vmem:[#allocation7] ss:$8 sps:$4 sm:$0xff]   ;;  %333 = vmatprep.subr.bf16.mxu1 %v848_v5  ;;  %v851_v7 = vld [vmem:[#allocation7 + $0x14] ss:$8 sps:$4 sm:$0xff]   ;;  %v853_v8 = vld [vmem:[#allocation7 + $0x10] ss:$8 sps:$4 sm:$0xff]  }
  0x5d   :  { %788 = vmatprep.subr.bf16.mxu0 %v1045_v0  ;;  %334 = vmatpush1.bf16.msra.mxu1 %v850_v6  ;;  %v854_v9 = vld [vmem:[#allocation7 + $0x24] ss:$8 sps:$4 sm:$0xff]   ;;  %v856_v12 = vld [vmem:[#allocation7 + $0x20] ss:$8 sps:$4 sm:$0xff]   ;;  %v857_v13 = vld [vmem:[#allocation7 + $0x34] ss:$8 sps:$4 sm:$0xff]  }
  0x5e   :  { %335 = vmatprep.subr.bf16.mxu1 %v851_v7  ;;  %v843_v10 = vld [vmem:[#allocation5 + $0x20] sm:$0xff]   ;;  %v844_v11 = vld [vmem:[#allocation5 + $0x28] sm:$0xff]   ;;  %v859_v14 = vld [vmem:[#allocation7 + $0x30] ss:$8 sps:$4 sm:$0xff]   ;;  %365 = vmatprep.mubr.bf16.mxu1 %v1047_v26  ;;  %v244_v59 = vshrl.u32 %v243_v58, 7  ;;  %s680_s1 = sshll.u32 %s1048_s13, 4  ;;  %s681_s1 = int_to_ptr.vmem [resolvable:$true] %s680_s1 }
  0x5f   :  { %v860_v15 = vld [vmem:[#allocation7 + $0x44] ss:$8 sps:$4 sm:$0xff]   ;;  %v845_v16 = vld [vmem:[#allocation5 + $0x30] sm:$0xff]   ;;  %v862_v17 = vld [vmem:[#allocation7 + $0x40] ss:$8 sps:$4 sm:$0xff]   ;;  %p1011_p13 = scmp.lt.s32.totalorder %s681_s1, %s681_s1 }
  0x60   :  { %789 = vmatpush3.bf16.msra.mxu0 %v840_v2  ;;  %v863_v18 = vld [vmem:[#allocation7 + $0x54] ss:$8 sps:$4 sm:$0xff]   ;;  %v865_v20 = vld [vmem:[#allocation7 + $0x50] ss:$8 sps:$4 sm:$0xff]   ;;  %v866_v22 = vld [vmem:[#allocation7 + $0x64] ss:$8 sps:$4 sm:$0xff]  }
  0x61   :  { %790 = vmatprep.subr.bf16.mxu0 %v1045_v0  ;;  %336 = vmatpush1.bf16.msra.mxu1 %v853_v8  ;;  %v846_v19 = vld [vmem:[#allocation5 + $0x38] sm:$0xff]   ;;  %v868_v23 = vld [vmem:[#allocation7 + $0x60] ss:$8 sps:$4 sm:$0xff]   ;;  %v876_v31 = vld [vmem:[#allocation8 + $0x50] sm:$0xff]   ;;  %v245_v60 = vsub.s32 0, %v244_v59  ;;  %v249_v62 = vsub.s32 1, %v244_v59 }
  0x62   :  { %337 = vmatprep.subr.bf16.mxu1 %v854_v9  ;;  %v847_v21 = vld [vmem:[#allocation2] sm:$0xff]   ;;  %v872_v27 = vld [vmem:[#allocation8 + $0x40] sm:$0xff]   ;;  %v874_v29 = vld [vmem:[#allocation8 + $0x48] sm:$0xff]  }
  0x63   :  { %v869_v24 = vld [vmem:[#allocation7 + $0x74] ss:$8 sps:$4 sm:$0xff]   ;;  %v871_v25 = vld [vmem:[#allocation7 + $0x70] ss:$8 sps:$4 sm:$0xff]   ;;  %v873_v28 = vld [vmem:[#allocation8] sm:$0xff]  }
  0x64   :  { %791 = vmatpush3.bf16.msra.mxu0 %v841_v3  ;;  %v875_v30 = vld [vmem:[#allocation8 + $0x8] sm:$0xff]   ;;  %v877_v32 = vld [vmem:[#allocation8 + $0x10] sm:$0xff]   ;;  %v878_v33 = vld [vmem:[#allocation8 + $0x58] sm:$0xff]  }
  0x65   :  { %792 = vmatprep.subr.bf16.mxu0 %v1045_v0  ;;  %338 = vmatpush1.bf16.msra.mxu1 %v856_v12  ;;  %v879_v34 = vld [vmem:[#allocation8 + $0x18] sm:$0xff]   ;;  %v880_v35 = vld [vmem:[#allocation8 + $0x60] sm:$0xff]   ;;  %v882_v37 = vld [vmem:[#allocation8 + $0x68] sm:$0xff]  }
  0x66   :  { %339 = vmatprep.subr.bf16.mxu1 %v857_v13  ;;  %v881_v36 = vld [vmem:[#allocation8 + $0x20] sm:$0xff]   ;;  %v694_v38 = vld [vmem:[%s1237_s2] ss:$0 sm:$0xff]  ;;  %v883_v48 = vld [vmem:[#allocation8 + $0x28] sm:$0xff]  }
  0x67   :  { %v884_v49 = vld [vmem:[#allocation8 + $0x70] sm:$0xff]   ;;  %v886_v51 = vld [vmem:[#allocation8 + $0x78] sm:$0xff]   ;;  %v888_v53 = vld [vmem:[#allocation10] sm:$0xff]  }
  0x68   :  { %793 = vmatpush3.bf16.msra.mxu0 %v842_v4  ;;  %v885_v50 = vld [vmem:[#allocation8 + $0x30] sm:$0xff]   ;;  %v887_v52 = vld [vmem:[#allocation8 + $0x38] sm:$0xff]   ;;  %v889_v54 = vld [vmem:[#allocation10 + $0x8] sm:$0xff]  }
  0x69   :  { %794 = vmatprep.subr.bf16.mxu0 %v1045_v0  ;;  %340 = vmatpush1.bf16.msra.mxu1 %v859_v14  ;;  %v890_v55 = vld [vmem:[#allocation10 + $0x10] sm:$0xff]   ;;  %v891_v56 = vld [vmem:[#allocation10 + $0x18] sm:$0xff]   ;;  %v892_v57 = vld [vmem:[#allocation10 + $0x20] sm:$0xff]  }
  0x6a   :  { %341 = vmatprep.subr.bf16.mxu1 %v860_v15  ;;  %v241_v61 = vld [vmem:[%s1239_s4] sm:$0x3] }
  0x6b   :  { %v246_v63 = vrot.slane %v241_v61, %v245_v60  ;;  %v250_v1 = vrot.slane %v241_v61, %v249_v62 }
  0x6c   :  { %795 = vmatpush3.bf16.msra.mxu0 %v843_v10 }
  0x6d   :  { %796 = vmatprep.subr.bf16.mxu0 %v1045_v0  ;;  %342 = vmatpush1.bf16.msra.mxu1 %v862_v17  ;;  %v894_v17 = vld [vmem:[#allocation10 + $0x30] sm:$0xff]  }
  0x6e   :  { %343 = vmatprep.subr.bf16.mxu1 %v863_v18  ;;  %v895_v18 = vld [vmem:[#allocation10 + $0x38] sm:$0xff]  }
  0x70   :  { %797 = vmatpush3.bf16.msra.mxu0 %v844_v11 }
  0x71   :  { %798 = vmatprep.subr.bf16.mxu0 %v1045_v0  ;;  %344 = vmatpush1.bf16.msra.mxu1 %v865_v20  ;;  %v720_v20 = vld [vmem:[%s1241_s6] ss:$0 sm:$0xff]  ;;  %s1006_s6 = scalar_lea.vmem %s681_s1, 256 }
  0x72   :  { %345 = vmatprep.subr.bf16.mxu1 %v866_v22  ;;  %p1007_p12 = scmp.ne.s32.totalorder %s681_s1, %s1006_s6  ;;  %p1012_p0 = scmp.lt.s32.totalorder %s1006_s6, %s1006_s6 }
  0x74   :  { %799 = vmatpush3.bf16.msra.mxu0 %v845_v16  ;;  %v893_v16 = vld [vmem:[#allocation10 + $0x28] sm:$0xff]   ;;  %p1013_p1 = por %p1012_p0, %p1011_p13 }
  0x75   :  { %800 = vmatprep.subr.bf16.mxu0 %v1045_v0  ;;  %346 = vmatpush1.bf16.msra.mxu1 %v868_v23 }
  0x76   :  { %347 = vmatprep.subr.bf16.mxu1 %v869_v24  ;;  %p1014_p2 = pnand %p1013_p1, %p1007_p12 }
  0x78   :  { %801 = vmatpush3.bf16.msra.mxu0 %v846_v19 }
  0x79   :  { %348 = vmatpush1.bf16.msra.mxu1 %v871_v25  ;;  %755 = vmatprep.subr.bf16.mxu0 %v872_v27 }
  0x7a   :  { %806 = vmatprep.subr.bf16.mxu1 %v1045_v0 }
  0x7b   :  { %803 = vmatmul.mubr.bf16.vlgmr.msra.gmra.mrb[0].mxu0 %v847_v21 }
  0x7c   :  { %756 = vmatpush3.bf16.msra.mxu0 %v873_v28 }
  0x7d   :  { %757 = vmatprep.subr.bf16.mxu0 %v874_v29 }
  0x80   :  { %758 = vmatpush3.bf16.msra.mxu0 %v875_v30 }
  0x81   :  { %759 = vmatprep.subr.bf16.mxu0 %v876_v31 }
  0x84   :  { %760 = vmatpush3.bf16.msra.mxu0 %v877_v32 }
  0x85   :  { %761 = vmatprep.subr.bf16.mxu0 %v878_v33 }
  0x88   :  { %762 = vmatpush3.bf16.msra.mxu0 %v879_v34 }
  0x89   :  { %763 = vmatprep.subr.bf16.mxu0 %v880_v35 }
  0x8c   :  { %764 = vmatpush3.bf16.msra.mxu0 %v881_v36 }
  0x8d   :  { %765 = vmatprep.subr.bf16.mxu0 %v882_v37 }
  0x90   :  { %766 = vmatpush3.bf16.msra.mxu0 %v883_v48 }
  0x91   :  { %767 = vmatprep.subr.bf16.mxu0 %v884_v49 }
  0x94   :  { %768 = vmatpush3.bf16.msra.mxu0 %v885_v50 }
  0x95   :  { %769 = vmatprep.subr.bf16.mxu0 %v886_v51 }
  0x98   :  { %770 = vmatpush3.bf16.msra.mxu0 %v887_v52 }
 0x14e   :  { %v215_v39 = vpop.f32.mrb[0].mxu0 }
 0x14f   :  { %v216_v40 = vadd.f32 %v694_v38, %v215_v39  ;;  %v804_v41 = vpop.f32.mrb[1].mxu0 }
 0x150   :  { %v218_v42 = vpop.f32.mrb[2].mxu0 }
 0x151   :  { %v219_v43 = vadd.f32 %v694_v38, %v218_v42  ;;  %v805_v44 = vpop.f32.mrb[3].mxu0  ;;  %v222_v45 = vmax.f32 %v216_v40, 0.0 }
 0x153   :  { %v223_v46 = vmax.f32 %v219_v43, 0.0 }
 0x155   :  { %v224_v47 = vpack.c.bf16 %v223_v46, %v222_v45 }
 0x157   :  { %366 = vmatmul.mubr.bf16.vlgmr.msra.gmra.mrb[0].mxu1 %v224_v47 }
 0x158   :  { %822 = vmatprep.mubr.msk.bf16.mxu1 %vm1046_vm0, %v1045_v0  ;;  %807 = vmatpush3.bf16.msra.mxu1 %v888_v53 }
 0x159   :  { %808 = vmatprep.subr.bf16.mxu1 %v1045_v0 }
 0x15c   :  { %809 = vmatpush3.bf16.msra.mxu1 %v889_v54 }
 0x15d   :  { %810 = vmatprep.subr.bf16.mxu1 %v1045_v0 }
 0x160   :  { %811 = vmatpush3.bf16.msra.mxu1 %v890_v55 }
 0x161   :  { %812 = vmatprep.subr.bf16.mxu1 %v1045_v0 }
 0x164   :  { %813 = vmatpush3.bf16.msra.mxu1 %v891_v56 }
 0x165   :  { %814 = vmatprep.subr.bf16.mxu1 %v1045_v0 }
 0x168   :  { %815 = vmatpush3.bf16.msra.mxu1 %v892_v57 }
 0x169   :  { %816 = vmatprep.subr.bf16.mxu1 %v1045_v0 }
 0x16c   :  { %817 = vmatpush3.bf16.msra.mxu1 %v893_v16 }
 0x16d   :  { %818 = vmatprep.subr.bf16.mxu1 %v1045_v0 }
 0x170   :  { %819 = vmatpush3.bf16.msra.mxu1 %v894_v17 }
 0x171   :  { %820 = vmatprep.subr.bf16.mxu1 %v1045_v0  ;;  %v737_v0 = vld [vmem:[%s1243_s8] ss:$0 sm:$0xff] }
 0x174   :  { %821 = vmatpush3.bf16.msra.mxu1 %v895_v18 }
 0x22a   :  { %v367_v2 = vpop.f32.mrb[0].mxu1 }
 0x22b   :  { %v368_v3 = vadd.f32 %v367_v2, %v246_v63  ;;  %v369_v4 = vpop.f32.mrb[1].mxu1 }
 0x22c   :  { %v370_v5 = vadd.f32 %v369_v4, %v250_v1  ;;  %v371_v6 = vpop.f32.mrb[2].mxu1 }
 0x22d   :  { %v372_v7 = vadd.f32 %v371_v6, %v246_v63  ;;  %v373_v8 = vpop.f32.mrb[3].mxu1  ;;  %v376_v10 = vmax.f32 %v368_v3, 0.0 }
 0x22e   :  { %v374_v9 = vadd.f32 %v373_v8, %v250_v1  ;;  %v377_v12 = vmax.f32 %v370_v5, 0.0 }
 0x22f   :  { %v378_v11 = vmax.f32 %v372_v7, 0.0 }
 0x230   :  { %v379_v13 = vmax.f32 %v374_v9, 0.0 }
 0x231   :  { %v380_v14 = vpack.c.bf16 %v378_v11, %v376_v10 }
 0x232   :  { %v381_v15 = vpack.c.bf16 %v379_v13, %v377_v12 }
 0x234   :  { %549 = vmatprep.mubr.bf16.mxu0 %v381_v15 }
 0x235   :  { %550 = vmatmul.mubr.bf16.vlgmr.msra.gmra.mrb[4].mxu0 %v380_v14 }
 0x308   :  { %v771_v19 = vpop.f32.mrb[4].mxu0 }
 0x309   :  { %v772_v21 = vpop.f32.mrb[5].mxu0 }
 0x30a   :  { %v773_v22 = vadd.f32 %v772_v21, %v771_v19  ;;  %v774_v23 = vpop.f32.mrb[6].mxu0 }
 0x30b   :  { %v775_v24 = vpop.f32.mrb[7].mxu0 }
 0x30c   :  { %v552_v25 = vadd.f32 %v773_v22, %v720_v20  ;;  %v776_v26 = vadd.f32 %v775_v24, %v774_v23 }
 0x30e   :  { %v555_v27 = vadd.f32 %v776_v26, %v720_v20  ;;  %v558_v28 = vmax.f32 %v552_v25, 0.0 }
 0x310   :  { %v559_v29 = vmax.f32 %v555_v27, 0.0 }
 0x312   :  { %v560_v30 = vpack.c.bf16 %v559_v29, %v558_v28 }
 0x314   :  { %823 = vmatmul.mubr.bf16.vlgmr.msra.gmra.mrb[4].mxu1 %v560_v30 }
 0x3e7   :  { %v666_v31 = vpop.f32.mrb[4].mxu1 }
 0x3e8   :  { %v667_v32 = vadd.f32 %v737_v0, %v666_v31  ;;  %v824_v33 = vpop.f32.mrb[5].mxu1 }
 0x3e9   :  { %v669_v34 = vpop.f32.mrb[6].mxu1 }
 0x3ea   :  { %673 = vst [vmem:[#allocation11] sm:$0xff] %v667_v32  ;;  %v670_v35 = vadd.f32 %v737_v0, %v669_v34  ;;  %v825_v36 = vpop.f32.mrb[7].mxu1 }
 0x3ec   :  { %674 = vst [vmem:[#allocation11 + $0x8] sm:$0xff] %v670_v35 }
 0x3ed   :  { %1017 = shalt.err (!%p1014_p2)
}
 0x3ee   :  { %s1018_s14 = scalar_lea.hbm %s1244_s9, 256 }
 0x3ef   :  { %p1019_p3 = scmp.ne.s32.totalorder %s1244_s9, %s1018_s14  ;;  %p1022_p4 = scmp.lt.u32.totalorder %s1018_s14, %s1244_s9 }
 0x3f1   :  { %p1024_p5 = pnand %p1022_p4, %p1019_p3 }
 0x3f3   :  { %1027 = shalt.err (!%p1024_p5)
}
 0x3f4   :  { %686 = dma.vmem_to_hbm [thread:$0]  %s681_s1, 256, %s1244_s9, [#allocation4], %s1042_s0, %s1042_s0, %s1043_s15  }
 0x3f5   :  { %1034 = dma.done.wait [#allocation4], 256  }
 0x3f6   :  { %1035 = vsyncadd [#allocation4], 4294967040 }
 0x3f7   :  { %690 = vsyncpa [#allocation3], 1 }
 0x3f8   :  { %691 = vsyncpa [#allocation6], 1 }
 0x3f9   :  { %692 = vsyncpa [#allocation9], 1 }
 0x3fa   :  { %693 = vsyncpa [#allocation4], 1 }

</bundles_post_ra>
